<compile_context>
chip_gen: v7x
topology: tpu7x:2x2x1
jax: 0.10.0
libtpu: 0.0.40
codegen_flags: <defaults>
</compile_context>

<pallas_src>
import functools

import jax
import jax.numpy as jnp
from jax.experimental import pallas as pl
from jax.experimental.pallas import tpu as pltpu

BN_EPS = 1e-5
_LANE = 128


def _round_up(x, m):
    return (x + m - 1) // m * m


def _choose_tile_n(n):
    """Largest power-of-two row tile <= 512 that still gives >= 2 grid steps
    (v7x megacore) without over-padding tiny N. Always a multiple of 8."""
    n8 = _round_up(n, 8)
    t = 512
    while t > 8 and n8 < 2 * t:
        t //= 2
    return t


# --------------------------------------------------------------------------- #
# Kernel: the whole MLP for one row-tile. Layer loop is unrolled at trace time.
# refs = (x_ref, [wt_ref, bss_ref] * (L-1), wt_ref, b_ref, o_ref)
# --------------------------------------------------------------------------- #
def _make_fused_mlp_kernel(num_layers):
    def kernel(*refs):
        x_ref = refs[0]
        o_ref = refs[-1]
        h = x_ref[...]  # (tile_n, c_in_pad) f32
        idx = 1
        for _ in range(num_layers - 1):
            wt_ref = refs[idx]       # (c_in_pad, c_out_pad), resident in VMEM
            bss_ref = refs[idx + 1]  # (3, c_out_pad): bias / bn_scale / bn_shift
            idx += 2
            bss = bss_ref[...]
            y = jnp.dot(h, wt_ref[...], preferred_element_type=jnp.float32)
            y = y + bss[0:1, :]                      # bias
            y = jnp.maximum(y, 0.0)                  # ReLU
            y = y * bss[1:2, :] + bss[2:3, :]        # folded BatchNorm (eval)
            h = y                                    # dropout: identity in eval
        wt_ref = refs[idx]
        b_ref = refs[idx + 1]                        # (1, c_out_pad)
        y = jnp.dot(h, wt_ref[...], preferred_element_type=jnp.float32)
        o_ref[...] = (y + b_ref[...]).astype(o_ref.dtype)

    return kernel


# --------------------------------------------------------------------------- #
# Parameter prep (runs once, outside jit): transpose, fold BN, pad to lanes.
# --------------------------------------------------------------------------- #
def prepare_mlp_params(params):
    lins, bns = params["lins"], params["bns"]
    num_layers = len(lins)
    flat = []
    for li in range(num_layers):
        w = lins[li]["weight"]            # [c_out, c_in]
        b = lins[li]["bias"]
        c_out, c_in = w.shape
        c_in_p = _round_up(c_in, _LANE)
        c_out_p = _round_up(c_out, _LANE)
        wt = jnp.zeros((c_in_p, c_out_p), jnp.float32)
        wt = wt.at[:c_in, :c_out].set(w.T.astype(jnp.float32))
        flat.append(wt)
        if li < num_layers - 1:
            bn = bns[li]
            scale = bn["gamma"] * jax.lax.rsqrt(bn["running_var"] + BN_EPS)
            shift = bn["beta"] - bn["running_mean"] * scale
            bss = jnp.zeros((3, c_out_p), jnp.float32)
            bss = (bss.at[0, :c_out].set(b)
                       .at[1, :c_out].set(scale)
                       .at[2, :c_out].set(shift))
            flat.append(bss)
        else:
            bvec = jnp.zeros((1, c_out_p), jnp.float32).at[0, :c_out].set(b)
            flat.append(bvec)
    return {
        "num_layers": num_layers,
        "in_dim": int(lins[0]["weight"].shape[1]),
        "out_dim": int(lins[-1]["weight"].shape[0]),
        "arrays": tuple(flat),
    }


# --------------------------------------------------------------------------- #
# Forward
# --------------------------------------------------------------------------- #
@functools.partial(jax.jit, static_argnames=("num_layers", "out_dim", "tile_n"))
def _mlp_forward_impl(x, arrays, num_layers, out_dim, tile_n):
    n, c_in = x.shape
    c_in_p = arrays[0].shape[0]
    out_p = arrays[-2].shape[1]          # padded out dim (last layer's W^T cols)
    n_pad = _round_up(n, tile_n)

    # Zero-pad rows to the tile and features to the lane-padded input width.
    x_p = jnp.zeros((n_pad, c_in_p), jnp.float32).at[:n, :c_in].set(x)

    grid = (n_pad // tile_n,)
    in_specs = [pl.BlockSpec((tile_n, c_in_p), lambda i: (i, 0))]
    # Weights / vectors: full-array blocks, resident for every grid step.
    for a in arrays:
        in_specs.append(pl.BlockSpec(a.shape, lambda i: (0, 0)))
    out_specs = pl.BlockSpec((tile_n, out_p), lambda i: (i, 0))

    out = pl.pallas_call(
        _make_fused_mlp_kernel(num_layers),
        out_shape=jax.ShapeDtypeStruct((n_pad, out_p), jnp.float32),
        grid=grid,
        in_specs=in_specs,
        out_specs=out_specs,
        compiler_params=pltpu.CompilerParams(
            dimension_semantics=("parallel",)),
    )(x_p, *arrays)

    return out[:n, :out_dim]


def mlp_forward(x, prepped, tile_n=None):
    if tile_n is None:
        tile_n = _choose_tile_n(x.shape[0])
    return _mlp_forward_impl(x, prepped["arrays"], prepped["num_layers"],
                             prepped["out_dim"], tile_n)


# --------------------------------------------------------------------------- #
# Synthetic parameters (shapes match the PyTorch module) + pure-JAX reference
# --------------------------------------------------------------------------- #
def init_mlp_params(key, in_channels, hidden_channels, out_channels, num_layers):
    params = {"lins": [], "bns": []}
    dims = ([in_channels, out_channels] if num_layers == 1 else
            [in_channels] + [hidden_channels] * (num_layers - 1) + [out_channels])
    for li in range(num_layers):
        c_in, c_out = dims[li], dims[li + 1]
        key, kw, kb = jax.random.split(key, 3)
        bound = 1.0 / jnp.sqrt(c_in)
        w = jax.random.uniform(kw, (c_out, c_in), jnp.float32, -bound, bound)
        b = jax.random.uniform(kb, (c_out,), jnp.float32, -bound, bound)
        params["lins"].append({"weight": w, "bias": b})
        if li < num_layers - 1:
            key, km, kv = jax.random.split(key, 3)
            params["bns"].append({
                "gamma": jnp.ones((c_out,), jnp.float32),
                "beta": jnp.zeros((c_out,), jnp.float32),
                "running_mean": 0.1 * jax.random.normal(km, (c_out,), jnp.float32),
                "running_var": 1.0 + 0.1 * jax.random.uniform(kv, (c_out,), jnp.float32),
            })
    return params


def mlp_forward_ref(x, params):
    num_layers = len(params["lins"])
    for li in range(num_layers - 1):
        lin, bn = params["lins"][li], params["bns"][li]
        x = x @ lin["weight"].T + lin["bias"]
        x = jnp.maximum(x, 0.0)
        x = ((x - bn["running_mean"]) / jnp.sqrt(bn["running_var"] + BN_EPS)
             * bn["gamma"] + bn["beta"])
    lin = params["lins"][-1]
    return x @ lin["weight"].T + lin["bias"]


if __name__ == "__main__":
    key = jax.random.PRNGKey(0)
    N, IN_C, HID_C, OUT_C, NUM_LAYERS = 64, 16, 32, 8, 3

    kx, kp = jax.random.split(key)
    x = jax.random.normal(kx, (N, IN_C), jnp.float32)
    params = init_mlp_params(kp, IN_C, HID_C, OUT_C, NUM_LAYERS)
    prepped = prepare_mlp_params(params)   # transpose / fold BN / pad: once, outside jit

    out = mlp_forward(x, prepped)
    jax.block_until_ready(out)

    ref = mlp_forward_ref(x, params)
    assert out.shape == (N, OUT_C)
    assert jnp.allclose(out, ref, atol=1e-4, rtol=1e-4), "mismatch vs reference"

    print("KERNEL_OK")
</pallas_src>

<mosaic_0001>
module attributes {stable_mosaic.version = 11 : i64} {
  func.func @kernel(%arg0: i32, %arg1: memref<32x128xf32, #tpu.memory_space<vmem>>, %arg2: memref<128x128xf32, #tpu.memory_space<vmem>>, %arg3: memref<3x128xf32, #tpu.memory_space<vmem>>, %arg4: memref<128x128xf32, #tpu.memory_space<vmem>>, %arg5: memref<3x128xf32, #tpu.memory_space<vmem>>, %arg6: memref<128x128xf32, #tpu.memory_space<vmem>>, %arg7: memref<1x128xf32, #tpu.memory_space<vmem>>, %arg8: memref<32x128xf32, #tpu.memory_space<vmem>>) attributes {dimension_semantics = [#tpu.dimension_semantics<parallel>], iteration_bounds = array<i64: 2>, scalar_prefetch = 0 : i64, scratch_operands = 0 : i64, tpu.core_type = #tpu.core_type<tc>, window_params = [{transform_indices = @transform_0, window_bounds = array<i64: 32, 128>}, {pipeline_mode = #tpu.pipeline_mode<synchronous>, transform_indices = @transform_1, window_bounds = array<i64: 128, 128>}, {pipeline_mode = #tpu.pipeline_mode<synchronous>, transform_indices = @transform_2, window_bounds = array<i64: 3, 128>}, {pipeline_mode = #tpu.pipeline_mode<synchronous>, transform_indices = @transform_3, window_bounds = array<i64: 128, 128>}, {pipeline_mode = #tpu.pipeline_mode<synchronous>, transform_indices = @transform_4, window_bounds = array<i64: 3, 128>}, {pipeline_mode = #tpu.pipeline_mode<synchronous>, transform_indices = @transform_5, window_bounds = array<i64: 128, 128>}, {pipeline_mode = #tpu.pipeline_mode<synchronous>, transform_indices = @transform_6, window_bounds = array<i64: 1, 128>}, {transform_indices = @transform_7, window_bounds = array<i64: 32, 128>}]} {
    %c0 = arith.constant 0 : index
    %c0_0 = arith.constant 0 : index
    %0 = vector.load %arg1[%c0, %c0_0] : memref<32x128xf32, #tpu.memory_space<vmem>>, vector<32x128xf32>
    %c0_1 = arith.constant 0 : index
    %c0_2 = arith.constant 0 : index
    %1 = vector.load %arg3[%c0_1, %c0_2] : memref<3x128xf32, #tpu.memory_space<vmem>>, vector<3x128xf32>
    %c0_3 = arith.constant 0 : index
    %c0_4 = arith.constant 0 : index
    %2 = vector.load %arg2[%c0_3, %c0_4] : memref<128x128xf32, #tpu.memory_space<vmem>>, vector<128x128xf32>
    %cst = arith.constant dense<0.000000e+00> : vector<32x128xf32>
    %3 = tpu.matmul %0, %2, %cst {dimension_numbers = #tpu.dot_dimension_numbers<[1], [0], [0], [1], [0, 0, 1, 1], [], []>} : vector<32x128xf32>, vector<128x128xf32>, vector<32x128xf32> -> vector<32x128xf32>
    %4 = vector.extract_strided_slice %1 {offsets = [0, 0], sizes = [1, 128], strides = [1, 1]} : vector<3x128xf32> to vector<1x128xf32>
    %5 = vector.broadcast %4 : vector<1x128xf32> to vector<32x128xf32>
    %6 = arith.addf %3, %5 : vector<32x128xf32>
    %cst_5 = arith.constant 0.000000e+00 : f32
    %7 = vector.broadcast %cst_5 : f32 to vector<32x128xf32>
    %8 = arith.maximumf %6, %7 : vector<32x128xf32>
    %9 = vector.extract_strided_slice %1 {offsets = [1, 0], sizes = [1, 128], strides = [1, 1]} : vector<3x128xf32> to vector<1x128xf32>
    %10 = vector.broadcast %9 : vector<1x128xf32> to vector<32x128xf32>
    %11 = arith.mulf %8, %10 : vector<32x128xf32>
    %12 = vector.extract_strided_slice %1 {offsets = [2, 0], sizes = [1, 128], strides = [1, 1]} : vector<3x128xf32> to vector<1x128xf32>
    %13 = vector.broadcast %12 : vector<1x128xf32> to vector<32x128xf32>
    %14 = arith.addf %11, %13 : vector<32x128xf32>
    %c0_6 = arith.constant 0 : index
    %c0_7 = arith.constant 0 : index
    %15 = vector.load %arg5[%c0_6, %c0_7] : memref<3x128xf32, #tpu.memory_space<vmem>>, vector<3x128xf32>
    %c0_8 = arith.constant 0 : index
    %c0_9 = arith.constant 0 : index
    %16 = vector.load %arg4[%c0_8, %c0_9] : memref<128x128xf32, #tpu.memory_space<vmem>>, vector<128x128xf32>
    %cst_10 = arith.constant dense<0.000000e+00> : vector<32x128xf32>
    %17 = tpu.matmul %14, %16, %cst_10 {dimension_numbers = #tpu.dot_dimension_numbers<[1], [0], [0], [1], [0, 0, 1, 1], [], []>} : vector<32x128xf32>, vector<128x128xf32>, vector<32x128xf32> -> vector<32x128xf32>
    %18 = vector.extract_strided_slice %15 {offsets = [0, 0], sizes = [1, 128], strides = [1, 1]} : vector<3x128xf32> to vector<1x128xf32>
    %19 = vector.broadcast %18 : vector<1x128xf32> to vector<32x128xf32>
    %20 = arith.addf %17, %19 : vector<32x128xf32>
    %cst_11 = arith.constant 0.000000e+00 : f32
    %21 = vector.broadcast %cst_11 : f32 to vector<32x128xf32>
    %22 = arith.maximumf %20, %21 : vector<32x128xf32>
    %23 = vector.extract_strided_slice %15 {offsets = [1, 0], sizes = [1, 128], strides = [1, 1]} : vector<3x128xf32> to vector<1x128xf32>
    %24 = vector.broadcast %23 : vector<1x128xf32> to vector<32x128xf32>
    %25 = arith.mulf %22, %24 : vector<32x128xf32>
    %26 = vector.extract_strided_slice %15 {offsets = [2, 0], sizes = [1, 128], strides = [1, 1]} : vector<3x128xf32> to vector<1x128xf32>
    %27 = vector.broadcast %26 : vector<1x128xf32> to vector<32x128xf32>
    %28 = arith.addf %25, %27 : vector<32x128xf32>
    %c0_12 = arith.constant 0 : index
    %c0_13 = arith.constant 0 : index
    %29 = vector.load %arg6[%c0_12, %c0_13] : memref<128x128xf32, #tpu.memory_space<vmem>>, vector<128x128xf32>
    %cst_14 = arith.constant dense<0.000000e+00> : vector<32x128xf32>
    %30 = tpu.matmul %28, %29, %cst_14 {dimension_numbers = #tpu.dot_dimension_numbers<[1], [0], [0], [1], [0, 0, 1, 1], [], []>} : vector<32x128xf32>, vector<128x128xf32>, vector<32x128xf32> -> vector<32x128xf32>
    %c0_15 = arith.constant 0 : index
    %c0_16 = arith.constant 0 : index
    %31 = vector.load %arg7[%c0_15, %c0_16] : memref<1x128xf32, #tpu.memory_space<vmem>>, vector<1x128xf32>
    %32 = vector.broadcast %31 : vector<1x128xf32> to vector<32x128xf32>
    %33 = arith.addf %30, %32 : vector<32x128xf32>
    %c0_17 = arith.constant 0 : index
    %c0_18 = arith.constant 0 : index
    %34 = vector.load %arg8[%c0_17, %c0_18] : memref<32x128xf32, #tpu.memory_space<vmem>>, vector<32x128xf32>
    tpu.vector_store %arg8[%c0_17, %c0_18], %33 {strides = array<i32>} : memref<32x128xf32, #tpu.memory_space<vmem>>, vector<32x128xf32>,
    return
  }
  func.func @transform_0(%arg0: i32) -> (i32, i32) {
    %c0_i32 = arith.constant 0 : i32
    %c0_i32_0 = arith.constant 0 : i32
    return %arg0, %c0_i32 : i32, i32
  }
  func.func @transform_1(%arg0: i32) -> (i32, i32) {
    %c0_i32 = arith.constant 0 : i32
    %c0_i32_0 = arith.constant 0 : i32
    %c0_i32_1 = arith.constant 0 : i32
    return %c0_i32, %c0_i32_0 : i32, i32
  }
  func.func @transform_2(%arg0: i32) -> (i32, i32) {
    %c0_i32 = arith.constant 0 : i32
    %c0_i32_0 = arith.constant 0 : i32
    %c0_i32_1 = arith.constant 0 : i32
    return %c0_i32, %c0_i32_0 : i32, i32
  }
  func.func @transform_3(%arg0: i32) -> (i32, i32) {
    %c0_i32 = arith.constant 0 : i32
    %c0_i32_0 = arith.constant 0 : i32
    %c0_i32_1 = arith.constant 0 : i32
    return %c0_i32, %c0_i32_0 : i32, i32
  }
  func.func @transform_4(%arg0: i32) -> (i32, i32) {
    %c0_i32 = arith.constant 0 : i32
    %c0_i32_0 = arith.constant 0 : i32
    %c0_i32_1 = arith.constant 0 : i32
    return %c0_i32, %c0_i32_0 : i32, i32
  }
  func.func @transform_5(%arg0: i32) -> (i32, i32) {
    %c0_i32 = arith.constant 0 : i32
    %c0_i32_0 = arith.constant 0 : i32
    %c0_i32_1 = arith.constant 0 : i32
    return %c0_i32, %c0_i32_0 : i32, i32
  }
  func.func @transform_6(%arg0: i32) -> (i32, i32) {
    %c0_i32 = arith.constant 0 : i32
    %c0_i32_0 = arith.constant 0 : i32
    %c0_i32_1 = arith.constant 0 : i32
    return %c0_i32, %c0_i32_0 : i32, i32
  }
  func.func @transform_7(%arg0: i32) -> (i32, i32) {
    %c0_i32 = arith.constant 0 : i32
    %c0_i32_0 = arith.constant 0 : i32
    return %arg0, %c0_i32 : i32, i32
  }
}

</mosaic_0001>

<bundles_post_ra>
// kernel: _mlp_forward_impl.1
= control target key start
LH: loop header
LB: loop body
LE: loop exit
PB: predicated region body
PF: predicated region fallthrough
CT: control target
= control target key end

     0   :  { %12 = vsyncpa [#allocation3], 0  ;;  %s1137_s24 = smov 0   ;;  %s1319_s0 = inlined_call_operand.vmem [shape: f32[64,128], index: 0, kind: input, shape index: {}]   ;;  %s1320_s1 = inlined_call_operand.vmem [shape: f32[128,128], index: 1, kind: input, shape index: {}]   ;;  %s1321_s2 = inlined_call_operand.vmem [shape: f32[3,128], index: 2, kind: input, shape index: {}]   ;;  %s1322_s3 = inlined_call_operand.vmem [shape: f32[128,128], index: 3, kind: input, shape index: {}]   ;;  %s1323_s4 = inlined_call_operand.vmem [shape: f32[3,128], index: 4, kind: input, shape index: {}]   ;;  %s1324_s5 = inlined_call_operand.hbm [shape: f32[128,128], index: 5, kind: input, shape index: {}]   ;;  %s1325_s6 = inlined_call_operand.vmem [shape: f32[1,128], index: 6, kind: input, shape index: {}]   ;;  %s1326_s7 = inlined_call_operand.vmem [shape: f32[64,128], index: 7, kind: output, shape index: {}]  }
   0x1 LB: > { %s733_s25 = sadd.s32 4294967295, %s1092_s24   ;;  %p735_p0 = scmp.ge.s32.totalorder %s1092_s24, 1  ;;  %s1092_s24 = sphi %s1137_s24, %s18_s24  }
   0x2   : > { %p201_p1 = scmp.lt.s32.totalorder %s1092_s24, 3  ;;  %s1094_s26 = smov [#allocation2]  }
   0x3   : > { %s225_s27 = sshll.u32 %s1094_s26, 4  ;;  %p1151_p3 = scmp.eq.s32.totalorder %s733_s25, 0  ;;  %s226_s27 = int_to_ptr.vmem [resolvable:$true] %s225_s27 }
   0x4   : > { %p1145_p2 = pnand %p735_p0, %p201_p1  ;;  %s1054_s10 = scalar_lea.hbm %s1324_s5, 2048 }
   0x5   : > { %s1331_s29 = scalar_select %p1151_p3, 1, 0 }
   0x6   : > { %s1330_s28 = scalar_select %p1145_p2, 1, 0 }
   0x7   : > { %p1037_p4 = pneg %p1145_p2  ;;  %p1055_p6 = scmp.ne.s32.totalorder %s1324_s5, %s1054_s10 }
   0x8   : > { %p1061_p10 = scmp.lt.u32.totalorder %s1054_s10, %s1324_s5 }
   0x9   : > { %p1159_p5 = pnand %p1151_p3, %p1037_p4 }
   0xb   : > { %p1056_p7 = pneg %p1159_p5 }
   0xd   : > { %p1057_p8 = pnand %p1056_p7, %p1055_p6 }
   0xf   : > { %p1058_p9 = pneg %p1057_p8 }
  0x11   : > { %p1063_p11 = pnand %p1061_p10, %p1058_p9 }
  0x13   : > { %1066 = shalt.err (!%p1063_p11)
}
  0x14   : > { %s1067_s15 = scalar_lea.vmem %s226_s27, 2048  ;;  %p1075_p1 = scmp.lt.s32.totalorder %s226_s27, %s226_s27 }
  0x15   : > { %p1068_p12 = scmp.ne.s32.totalorder %s226_s27, %s1067_s15  ;;  %p1076_p4 = scmp.lt.s32.totalorder %s1067_s15, %s1067_s15 }
  0x17   : > { %p1070_p13 = pnand %p1068_p12, %p1056_p7  ;;  %p1077_p3 = por %p1076_p4, %p1075_p1 }
  0x19   : > { %p1071_p0 = pneg %p1070_p13 }
  0x1b   : > { %p1078_p2 = pnand %p1077_p3, %p1071_p0 }
  0x1d   : > { %1081 = shalt.err (!%p1078_p2)
}
  0x1e   : > { %s1095_s16 = smov 128   ;;  %s1096_s17 = smov 8  }
  0x1f   : > { %1040 = dma.hbm_to_vmem [thread:$0]  (!%p1159_p5), %s1324_s5, 2048, %s226_s27, [#allocation3], %s1095_s16, %s1095_s16, %s1096_s17  }
  0x20   : > { %p1333_p6 = scmp.ne.s32.totalorder %s1330_s28, 0 }
  0x21   : > { %p1334_p8 = scmp.ne.s32.totalorder (!%p1333_p6), %s1331_s29, 0 }
  0x22   : > { %253 = sbr.rel (%p1333_p6) target bundleno = 741 (0x2e5), region = 48 }
  0x29   : > { %1087 = dma.done.wait (%p1334_p8), [#allocation3], 2048  }
  0x2a   : > { %1089 = vsyncadd (%p1334_p8), [#allocation3], 4294965248  ;;  %s740_s20 = sshll.u32 %s733_s25, 2  ;;  %v302_v0 = vld [vmem:[%s1320_s1] sm:$0xff]  ;;  %v303_v1 = vld [vmem:[%s1320_s1 + $0x8] sm:$0xff] }
  0x2b   : > { %p286_p2 = scmp.lt.s32.totalorder %s740_s20, 7  ;;  %v304_v2 = vld [vmem:[%s1320_s1 + $0x10] sm:$0xff]  ;;  %v921_v3 = vpack.c.bf16 %v303_v1, %v302_v0  ;;  %v305_v4 = vld [vmem:[%s1320_s1 + $0x18] sm:$0xff]  ;;  %v306_v6 = vld [vmem:[%s1320_s1 + $0x20] sm:$0xff] }
  0x2c   : > { %v925_v5 = vpack.c.bf16 %v305_v4, %v304_v2  ;;  %v307_v7 = vld [vmem:[%s1320_s1 + $0x28] sm:$0xff]  ;;  %v308_v10 = vld [vmem:[%s1320_s1 + $0x30] sm:$0xff]  ;;  %v309_v11 = vld [vmem:[%s1320_s1 + $0x38] sm:$0xff] }
  0x2d   : > { %s1336_s20 = smov (!%p286_p2, %s740_s20), 7  ;;  %922 = vmatprep.subr.bf16.mxu0 %v921_v3  ;;  %v929_v8 = vpack.c.bf16 %v307_v7, %v306_v6  ;;  %v428_v12 = vld [vmem:[%s1322_s3] sm:$0xff]  ;;  %v429_v13 = vld [vmem:[%s1322_s3 + $0x8] sm:$0xff]  ;;  %v430_v14 = vld [vmem:[%s1322_s3 + $0x10] sm:$0xff]  ;;  %v933_v18 = vpack.c.bf16 %v309_v11, %v308_v10  ;;  %v318_v6 = vlaneseq }
  0x2e   : > { %s741_s21 = sshll.u32 %s1336_s20, 3  ;;  %924 = vmatpush3.bf16.msra.mxu0 %v921_v3  ;;  %v431_v15 = vld [vmem:[%s1322_s3 + $0x18] sm:$0xff]  ;;  %v953_v16 = vpack.c.bf16 %v429_v13, %v428_v12  ;;  %v432_v19 = vld [vmem:[%s1322_s3 + $0x20] sm:$0xff]  ;;  %v433_v20 = vld [vmem:[%s1322_s3 + $0x28] sm:$0xff] }
  0x2f   : > { %s1213_s14 = scalar_lea.vmem %s1319_s0, %s741_s21  ;;  %926 = vmatprep.subr.bf16.mxu0 %v925_v5  ;;  %v957_v17 = vpack.c.bf16 %v431_v15, %v430_v14  ;;  %v310_v21 = vld [vmem:[%s1320_s1 + $0x40] sm:$0xff]  ;;  %v311_v22 = vld [vmem:[%s1320_s1 + $0x48] sm:$0xff]  ;;  %v961_v23 = vpack.c.bf16 %v433_v20, %v432_v19  ;;  %v434_v25 = vld [vmem:[%s1322_s3 + $0x30] sm:$0xff]  ;;  %v1297_v7 = vshrl.u32 %v318_v6, 7  ;;  %s295_s17 = scalar_lea.vmem %s1326_s7, %s741_s21 }
  0x30   : > { %v297_v9 = vld [vmem:[%s1213_s14] sm:$0xff]  ;;  %954 = vmatprep.subr.bf16.mxu1 %v953_v16  ;;  %v937_v24 = vpack.c.bf16 %v311_v22, %v310_v21  ;;  %v435_v26 = vld [vmem:[%s1322_s3 + $0x38] sm:$0xff]  ;;  %v312_v27 = vld [vmem:[%s1320_s1 + $0x50] sm:$0xff] }
  0x31   : > { %839 = vmatprep.mubr.f32.mxu0 %v297_v9  ;;  %956 = vmatpush3.bf16.msra.mxu1 %v953_v16  ;;  %v313_v28 = vld [vmem:[%s1320_s1 + $0x58] sm:$0xff]  ;;  %v965_v29 = vpack.c.bf16 %v435_v26, %v434_v25  ;;  %v436_v31 = vld [vmem:[%s1322_s3 + $0x40] sm:$0xff]  ;;  %v437_v32 = vld [vmem:[%s1322_s3 + $0x48] sm:$0xff]  ;;  %v413_v11 = vsub.s32 1, %v1297_v7  ;;  %v421_v13 = vsub.s32 2, %v1297_v7 }
  0x32   : > { %928 = vmatpush3.bf16.msra.mxu0 %v925_v5  ;;  %958 = vmatprep.subr.bf16.mxu1 %v957_v17  ;;  %v941_v30 = vpack.c.bf16 %v313_v28, %v312_v27  ;;  %v314_v33 = vld [vmem:[%s1320_s1 + $0x60] sm:$0xff]  ;;  %v315_v34 = vld [vmem:[%s1320_s1 + $0x68] sm:$0xff]  ;;  %v969_v35 = vpack.c.bf16 %v437_v32, %v436_v31  ;;  %v438_v37 = vld [vmem:[%s1322_s3 + $0x50] sm:$0xff] }
  0x33   : > { %930 = vmatprep.subr.bf16.mxu0 %v929_v8  ;;  %v945_v36 = vpack.c.bf16 %v315_v34, %v314_v33  ;;  %v439_v38 = vld [vmem:[%s1322_s3 + $0x58] sm:$0xff]  ;;  %v316_v39 = vld [vmem:[%s1320_s1 + $0x70] sm:$0xff]  ;;  %v298_v43 = vld [vmem:[%s1213_s14 + $0x8] sm:$0xff] }
  0x34   : > { %v317_v40 = vld [vmem:[%s1320_s1 + $0x78] sm:$0xff]  ;;  %v973_v41 = vpack.c.bf16 %v439_v38, %v438_v37  ;;  %v299_v44 = vld [vmem:[%s1213_s14 + $0x10] sm:$0xff]  ;;  %v440_v46 = vld [vmem:[%s1322_s3 + $0x60] sm:$0xff] }
  0x35   : > { %960 = vmatpush3.bf16.msra.mxu1 %v957_v17  ;;  %v949_v42 = vpack.c.bf16 %v317_v40, %v316_v39  ;;  %v300_v45 = vld [vmem:[%s1213_s14 + $0x18] sm:$0xff]  ;;  %v441_v47 = vld [vmem:[%s1322_s3 + $0x68] sm:$0xff]  ;;  %v442_v49 = vld [vmem:[%s1322_s3 + $0x70] sm:$0xff] }
  0x36   : > { %932 = vmatpush3.bf16.msra.mxu0 %v929_v8  ;;  %962 = vmatprep.subr.bf16.mxu1 %v961_v23  ;;  %v977_v48 = vpack.c.bf16 %v441_v47, %v440_v46  ;;  %v443_v50 = vld [vmem:[%s1322_s3 + $0x78] sm:$0xff]  ;;  %v553_v52 = vld [vmem:[#allocation2] sm:$0xff]  ;;  %v554_v53 = vld [vmem:[#allocation2 + $0x8] sm:$0xff]  ;;  %v320_v8 = vsub.s32 0, %v1297_v7 }
  0x37   : > { %934 = vmatprep.subr.bf16.mxu0 %v933_v18  ;;  %v981_v51 = vpack.c.bf16 %v443_v50, %v442_v49  ;;  %v555_v54 = vld [vmem:[#allocation2 + $0x10] sm:$0xff]  ;;  %v985_v55 = vpack.c.bf16 %v554_v53, %v553_v52  ;;  %v556_v56 = vld [vmem:[#allocation2 + $0x18] sm:$0xff]  ;;  %v557_v58 = vld [vmem:[#allocation2 + $0x20] sm:$0xff] }
  0x38   : > { %v989_v57 = vpack.c.bf16 %v556_v56, %v555_v54  ;;  %v558_v59 = vld [vmem:[#allocation2 + $0x28] sm:$0xff]  ;;  %v559_v61 = vld [vmem:[#allocation2 + $0x30] sm:$0xff]  ;;  %v560_v62 = vld [vmem:[#allocation2 + $0x38] sm:$0xff] }
  0x39   : > { %964 = vmatpush3.bf16.msra.mxu1 %v961_v23  ;;  %v993_v60 = vpack.c.bf16 %v558_v59, %v557_v58  ;;  %v997_v63 = vpack.c.bf16 %v560_v62, %v559_v61  ;;  %v561_v0 = vld [vmem:[#allocation2 + $0x40] sm:$0xff]  ;;  %v562_v1 = vld [vmem:[#allocation2 + $0x48] sm:$0xff]  ;;  %v563_v3 = vld [vmem:[#allocation2 + $0x50] sm:$0xff] }
  0x3a   : > { %936 = vmatpush3.bf16.msra.mxu0 %v933_v18  ;;  %966 = vmatprep.subr.bf16.mxu1 %v965_v29  ;;  %v1001_v2 = vpack.c.bf16 %v562_v1, %v561_v0  ;;  %v564_v4 = vld [vmem:[#allocation2 + $0x58] sm:$0xff]  ;;  %v301_v9 = vld [vmem:[%s1321_s2] sm:$0x7]  ;;  %v567_v38 = vld [vmem:[#allocation2 + $0x70] sm:$0xff] }
  0x3b   : > { %938 = vmatprep.subr.bf16.mxu0 %v937_v24  ;;  %v1005_v5 = vpack.c.bf16 %v564_v4, %v563_v3  ;;  %v321_v10 = vrot.slane %v301_v9, %v320_v8  ;;  %v414_v15 = vrot.slane %v301_v9, %v413_v11  ;;  %v422_v21 = vrot.slane %v301_v9, %v421_v13  ;;  %v568_v39 = vld [vmem:[#allocation2 + $0x78] sm:$0xff]  ;;  %v744_v1 = vld [vmem:[%s1325_s6] ss:$0 sm:$0xff] }
  0x3c   : > { %v1013_v40 = vpack.c.bf16 %v568_v39, %v567_v38 }
  0x3d   : > { %968 = vmatpush3.bf16.msra.mxu1 %v965_v29 }
  0x3e   : > { %940 = vmatpush3.bf16.msra.mxu0 %v937_v24  ;;  %970 = vmatprep.subr.bf16.mxu1 %v969_v35 }
  0x3f   : > { %942 = vmatprep.subr.bf16.mxu0 %v941_v30 }
  0x41   : > { %972 = vmatpush3.bf16.msra.mxu1 %v969_v35  ;;  %v565_v35 = vld [vmem:[#allocation2 + $0x60] sm:$0xff] }
  0x42   : > { %944 = vmatpush3.bf16.msra.mxu0 %v941_v30  ;;  %974 = vmatprep.subr.bf16.mxu1 %v973_v41 }
  0x43   : > { %946 = vmatprep.subr.bf16.mxu0 %v945_v36 }
  0x45   : > { %976 = vmatpush3.bf16.msra.mxu1 %v973_v41  ;;  %v427_v41 = vld [vmem:[%s1323_s4] sm:$0x7] }
  0x46   : > { %948 = vmatpush3.bf16.msra.mxu0 %v945_v36  ;;  %978 = vmatprep.subr.bf16.mxu1 %v977_v48  ;;  %v566_v36 = vld [vmem:[#allocation2 + $0x68] sm:$0xff]  ;;  %v548_v49 = vrot.slane %v427_v41, %v421_v13 }
  0x47   : > { %950 = vmatprep.subr.bf16.mxu0 %v949_v42  ;;  %v1009_v37 = vpack.c.bf16 %v566_v36, %v565_v35 }
  0x49   : > { %980 = vmatpush3.bf16.msra.mxu1 %v977_v48 }
  0x4a   : > { %952 = vmatpush3.bf16.msra.mxu0 %v949_v42  ;;  %982 = vmatprep.subr.bf16.mxu1 %v981_v51  ;;  %v447_v42 = vrot.slane %v427_v41, %v320_v8 }
  0x4b   : > { %986 = vmatprep.subr.bf16.mxu0 %v985_v55 }
  0x4d   : > { %840 = vmatmul.mubr.f32.vlgmr.msra.gmra.mrb[0].mxu0 %v298_v43  ;;  %984 = vmatpush3.bf16.msra.mxu1 %v981_v51 }
  0x4e   : > { %842 = vmatprep.mubr.f32.mxu0 %v299_v44  ;;  %1017 = vmatprep.subr.bf16.mxu1 %v985_v55 }
  0x4f   : > { %988 = vmatpush3.bf16.msra.mxu0 %v985_v55 }
  0x50   : > { %990 = vmatprep.subr.bf16.mxu0 %v989_v57 }
  0x51   : > { %843 = vmatmul.mubr.f32.gmra.mrb[2].mxu0 %v300_v45  ;;  %v540_v45 = vrot.slane %v427_v41, %v413_v11 }
  0x53   : > { %992 = vmatpush3.bf16.msra.mxu0 %v989_v57 }
  0x54   : > { %994 = vmatprep.subr.bf16.mxu0 %v993_v60 }
  0x57   : > { %996 = vmatpush3.bf16.msra.mxu0 %v993_v60 }
  0x58   : > { %998 = vmatprep.subr.bf16.mxu0 %v997_v63 }
  0x5b   : > { %1000 = vmatpush3.bf16.msra.mxu0 %v997_v63 }
  0x5c   : > { %1002 = vmatprep.subr.bf16.mxu0 %v1001_v2 }
  0x5f   : > { %1004 = vmatpush3.bf16.msra.mxu0 %v1001_v2 }
  0x60   : > { %1006 = vmatprep.subr.bf16.mxu0 %v1005_v5 }
  0x63   : > { %1008 = vmatpush3.bf16.msra.mxu0 %v1005_v5 }
  0x64   : > { %1010 = vmatprep.subr.bf16.mxu0 %v1009_v37 }
  0x67   : > { %1012 = vmatpush3.bf16.msra.mxu0 %v1009_v37 }
  0x68   : > { %1014 = vmatprep.subr.bf16.mxu0 %v1013_v40 }
  0x6b   : > { %1016 = vmatpush3.bf16.msra.mxu0 %v1013_v40 }
 0x120   : > { %v841_v12 = vpop.f32.mrb[0].mxu0 }
 0x121   : > { %v394_v14 = vadd.f32 %v841_v12, %v321_v10  ;;  %v388_v16 = vpop.f32.mrb[1].mxu0 }
 0x122   : > { %v389_v17 = vadd.f32 %v388_v16, %v321_v10 }
 0x123   : > { %v408_v18 = vmax.f32 %v394_v14, 0.0 }
 0x124   : > { %v407_v19 = vmax.f32 %v389_v17, 0.0  ;;  %v844_v20 = vpop.f32.mrb[2].mxu0 }
 0x125   : > { %v416_v22 = vmul.f32 %v414_v15, %v408_v18  ;;  %v404_v23 = vadd.f32 %v844_v20, %v321_v10  ;;  %v398_v24 = vpop.f32.mrb[3].mxu0 }
 0x126   : > { %v399_v25 = vadd.f32 %v398_v24, %v321_v10  ;;  %v415_v26 = vmul.f32 %v414_v15, %v407_v19 }
 0x127   : > { %v410_v27 = vmax.f32 %v404_v23, 0.0  ;;  %v424_v31 = vadd.f32 %v422_v21, %v416_v22 }
 0x128   : > { %v409_v28 = vmax.f32 %v399_v25, 0.0  ;;  %v423_v29 = vadd.f32 %v422_v21, %v415_v26 }
 0x129   : > { %v418_v30 = vmul.f32 %v414_v15, %v410_v27 }
 0x12a   : > { %v417_v32 = vmul.f32 %v414_v15, %v409_v28  ;;  %877 = vmatprep.mubr.f32.mxu1 %v423_v29 }
 0x12b   : > { %878 = vmatmul.mubr.f32.vlgmr.msra.gmra.mrb[0].mxu1 %v424_v31  ;;  %v426_v34 = vadd.f32 %v422_v21, %v418_v30 }
 0x12c   : > { %v425_v33 = vadd.f32 %v422_v21, %v417_v32  ;;  %1025 = vmatpush3.bf16.msra.mxu1 %v985_v55 }
 0x12d   : > { %1018 = vmatprep.subr.bf16.mxu1 %v989_v57 }
 0x12e   : > { %880 = vmatprep.mubr.f32.mxu1 %v425_v33 }
 0x12f   : > { %881 = vmatmul.mubr.f32.gmra.mrb[2].mxu1 %v426_v34 }
 0x130   : > { %1026 = vmatpush3.bf16.msra.mxu1 %v989_v57 }
 0x131   : > { %1019 = vmatprep.subr.bf16.mxu1 %v993_v60 }
 0x134   : > { %1027 = vmatpush3.bf16.msra.mxu1 %v993_v60 }
 0x135   : > { %1020 = vmatprep.subr.bf16.mxu1 %v997_v63 }
 0x138   : > { %1028 = vmatpush3.bf16.msra.mxu1 %v997_v63 }
 0x139   : > { %1021 = vmatprep.subr.bf16.mxu1 %v1001_v2 }
 0x13c   : > { %1029 = vmatpush3.bf16.msra.mxu1 %v1001_v2 }
 0x13d   : > { %1022 = vmatprep.subr.bf16.mxu1 %v1005_v5 }
 0x140   : > { %1030 = vmatpush3.bf16.msra.mxu1 %v1005_v5 }
 0x141   : > { %1023 = vmatprep.subr.bf16.mxu1 %v1009_v37 }
 0x144   : > { %1031 = vmatpush3.bf16.msra.mxu1 %v1009_v37 }
 0x145   : > { %1024 = vmatprep.subr.bf16.mxu1 %v1013_v40 }
 0x148   : > { %1032 = vmatpush3.bf16.msra.mxu1 %v1013_v40 }
 0x1fe   : > { %v879_v43 = vpop.f32.mrb[0].mxu1 }
 0x1ff   : > { %v520_v44 = vadd.f32 %v879_v43, %v447_v42  ;;  %v514_v46 = vpop.f32.mrb[1].mxu1 }
 0x200   : > { %v515_v47 = vadd.f32 %v514_v46, %v447_v42 }
 0x201   : > { %v534_v48 = vmax.f32 %v520_v44, 0.0 }
 0x202   : > { %v533_v50 = vmax.f32 %v515_v47, 0.0  ;;  %v882_v51 = vpop.f32.mrb[2].mxu1 }
 0x203   : > { %v542_v52 = vmul.f32 %v540_v45, %v534_v48  ;;  %v530_v53 = vadd.f32 %v882_v51, %v447_v42  ;;  %v524_v54 = vpop.f32.mrb[3].mxu1 }
 0x204   : > { %v541_v55 = vmul.f32 %v540_v45, %v533_v50  ;;  %v525_v56 = vadd.f32 %v524_v54, %v447_v42 }
 0x205   : > { %v536_v57 = vmax.f32 %v530_v53, 0.0  ;;  %v550_v60 = vadd.f32 %v548_v49, %v542_v52 }
 0x206   : > { %v535_v58 = vmax.f32 %v525_v56, 0.0  ;;  %v549_v59 = vadd.f32 %v548_v49, %v541_v55 }
 0x207   : > { %v544_v61 = vmul.f32 %v540_v45, %v536_v57 }
 0x208   : > { %v543_v62 = vmul.f32 %v540_v45, %v535_v58  ;;  %915 = vmatprep.mubr.f32.mxu0 %v549_v59 }
 0x209   : > { %916 = vmatmul.mubr.f32.vlgmr.msra.gmra.mrb[4].mxu0 %v550_v60  ;;  %v552_v0 = vadd.f32 %v548_v49, %v544_v61 }
 0x20a   : > { %v551_v63 = vadd.f32 %v548_v49, %v543_v62 }
 0x20c   : > { %918 = vmatprep.mubr.f32.mxu1 %v551_v63 }
 0x20d   : > { %919 = vmatmul.mubr.f32.vlgmr.msra.gmra.mrb[4].mxu1 %v552_v0 }
 0x2dc   : > { %v917_v2 = vpop.f32.mrb[4].mxu0 }
 0x2dd   : > { %v642_v3 = vpop.f32.mrb[5].mxu0  ;;  %v648_v5 = vadd.f32 %v917_v2, %v744_v1 }
 0x2de   : > { %v643_v4 = vadd.f32 %v744_v1, %v642_v3 }
 0x2df   : > { %662 = vst [vmem:[%s295_s17 + $0x8] sm:$0xff] %v648_v5 }
 0x2e0   : > { %661 = vst [vmem:[%s295_s17] sm:$0xff] %v643_v4  ;;  %v920_v6 = vpop.f32.mrb[4].mxu1 }
 0x2e1   : > { %v652_v7 = vpop.f32.mrb[5].mxu1  ;;  %v658_v9 = vadd.f32 %v920_v6, %v744_v1 }
 0x2e2   : > { %v653_v8 = vadd.f32 %v744_v1, %v652_v7 }
 0x2e3   : > { %664 = vst [vmem:[%s295_s17 + $0x18] sm:$0xff] %v658_v9 }
 0x2e4   : > { %663 = vst [vmem:[%s295_s17 + $0x10] sm:$0xff] %v653_v8 }
 0x2e5 PF: > { %s18_s24 = sadd.s32 1, %s1092_s24  }
 0x2e6   : > { %p15_p3 = scmp.ge.s32.totalorder %s18_s24, 4  }
 0x2e8   :  { %17 = sbr.rel (!%p15_p3) target bundleno = 1 (0x1), region = 83 }
 0x2ef   :  { %687 = vsyncpa [#allocation3], 1 }
 0x2f0   :  { %689 = vsyncpa [#allocation3 + $0x1], 1 }

</bundles_post_ra>
